<compile_context>
chip_gen: v6e
topology: v6e:2x2x1
jax: 0.10.0
libtpu: 0.0.40
codegen_flags: <defaults>
</compile_context>

<pallas_src>
import jax
import jax.numpy as jnp
from jax import lax
from jax.experimental import pallas as pl
from jax.experimental.pallas import tpu as pltpu


def _round_up(x, m):
    return ((x + m - 1) // m) * m


def _classifier_kernel(x_ref, w_ref, b_ref, o_ref):
    # x_ref: (1, C_pad, T_pad)        one sample; channels on sublanes, time on lanes
    # w_ref: (K, ncls_pad, C_pad)     per-tap weight matrices (grid-resident)
    # b_ref: (ncls_pad, 1)            bias column (padded class rows hold -1e30)
    # o_ref: (1, ncls_pad, T_out_pad) log-probs; classes on sublanes, time on lanes
    k_taps = w_ref.shape[0]
    ncls_p = o_ref.shape[1]
    t_out = o_ref.shape[2]

    x = x_ref[0]                                          # (C_pad, T_pad)
    acc = jnp.zeros((ncls_p, t_out), jnp.float32)
    for k in range(k_taps):                               # static, small K
        acc = acc + jnp.dot(w_ref[k], x[:, k:k + t_out],
                            preferred_element_type=jnp.float32)
    logits = acc + b_ref[...]                             # bias broadcast over lanes

    # numerically stable log-softmax over the class (sublane) axis
    m = jnp.max(logits, axis=0, keepdims=True)
    z = logits - m
    lse = jnp.log(jnp.sum(jnp.exp(z), axis=0, keepdims=True))
    o_ref[0] = z - lse


def eeg_classifier_pallas(data, weight, bias):
    """Forward pass of EEGClassifier.

    data:   (N, C_in, T, 1)          float32 (PyTorch NCHW)
    weight: (n_classes, C_in, K, 1)  float32
    bias:   (n_classes,)             float32
    returns (N, n_classes, T_out), or (N, n_classes) if T_out == 1
    """
    N, C, T, Wd = data.shape
    assert Wd == 1
    ncls, Cw, K, Kw = weight.shape
    assert Cw == C and Kw == 1
    T_out = T - K + 1
    assert T_out >= 1

    # Pad to TPU-friendly tiles: classes/channels -> multiple of 8 (sublanes),
    # output time -> multiple of 128 (lanes).
    C_pad = _round_up(C, 8)
    ncls_pad = _round_up(ncls, 8)
    T_out_pad = _round_up(T_out, 128)
    T_pad = T_out_pad + K - 1            # >= T, so all real samples fit

    x2 = data[..., 0].astype(jnp.float32)                            # (N, C, T)
    x_pad = jnp.pad(x2, ((0, 0), (0, C_pad - C), (0, T_pad - T)))    # zeros

    w_t = jnp.transpose(weight[..., 0].astype(jnp.float32), (2, 0, 1))  # (K, ncls, C)
    w_pad = jnp.pad(w_t, ((0, 0), (0, ncls_pad - ncls), (0, C_pad - C)))

    b_pad = jnp.full((ncls_pad,), -1e30, dtype=jnp.float32)
    b_pad = b_pad.at[:ncls].set(bias.astype(jnp.float32)).reshape(ncls_pad, 1)

    flops = 2 * N * K * ncls_pad * C_pad * T_out_pad
    transcendentals = 2 * N * ncls_pad * T_out_pad                    # exp + log
    bytes_accessed = 4 * (N * C_pad * T_pad + K * ncls_pad * C_pad
                          + ncls_pad + N * ncls_pad * T_out_pad)

    out = pl.pallas_call(
        _classifier_kernel,
        out_shape=jax.ShapeDtypeStruct((N, ncls_pad, T_out_pad), jnp.float32),
        grid=(N,),
        in_specs=[
            pl.BlockSpec((1, C_pad, T_pad), lambda i: (i, 0, 0)),
            pl.BlockSpec((K, ncls_pad, C_pad), lambda i: (0, 0, 0)),   # resident
            pl.BlockSpec((ncls_pad, 1), lambda i: (0, 0)),             # resident
        ],
        out_specs=pl.BlockSpec((1, ncls_pad, T_out_pad), lambda i: (i, 0, 0)),
        compiler_params=pltpu.CompilerParams(
            dimension_semantics=("parallel",),          # shard batch across TCs (v7x)
            vmem_limit_bytes=32 * 1024 * 1024),
        cost_estimate=pl.CostEstimate(
            flops=int(flops),
            transcendentals=int(transcendentals),
            bytes_accessed=int(bytes_accessed)),
    )(x_pad, w_pad, b_pad)

    # Strip padding: already in PyTorch layout (N, n_classes, T_out).
    out = out[:, :ncls, :T_out]
    # _squeeze_final_output: width already gone; squeeze time if size 1.
    if T_out == 1:
        out = out[:, :, 0]
    return out


def _reference(data, weight, bias):
    """Pure-JAX reference mirroring PyTorch semantics."""
    y = lax.conv_general_dilated(
        data, weight, window_strides=(1, 1), padding="VALID",
        dimension_numbers=("NCHW", "OIHW", "NCHW"))
    y = y + bias.reshape(1, -1, 1, 1)
    y = jax.nn.log_softmax(y, axis=1)
    y = y[:, :, :, 0]
    if y.shape[2] == 1:
        y = y[:, :, 0]
    return y


if __name__ == "__main__":
    # Small shapes consistent with the module:
    # batch=4, filtersize (C_in)=8, time=16, n_out_time (kernel K)=6, n_classes=4
    N, C_in, T, K, n_classes = 4, 8, 16, 6, 4

    key = jax.random.PRNGKey(0)
    k_x, k_w = jax.random.split(key)

    data = jax.random.normal(k_x, (N, C_in, T, 1), dtype=jnp.float32)

    # Deterministic xavier_uniform_(gain=1) for conv weight (n_classes, C_in, K, 1)
    fan_in = C_in * K * 1
    fan_out = n_classes * K * 1
    bound = (6.0 / (fan_in + fan_out)) ** 0.5
    weight = jax.random.uniform(k_w, (n_classes, C_in, K, 1),
                                dtype=jnp.float32, minval=-bound, maxval=bound)
    bias = jnp.zeros((n_classes,), dtype=jnp.float32)   # init.constant_(bias, 0)

    out = jax.block_until_ready(eeg_classifier_pallas(data, weight, bias))

    ref = _reference(data, weight, bias)
    assert out.shape == ref.shape, (out.shape, ref.shape)
    assert jnp.allclose(out, ref, atol=1e-4, rtol=1e-4), "mismatch vs reference"

    print("KERNEL_OK")
</pallas_src>

<mosaic_0001>
module attributes {stable_mosaic.version = 11 : i64} {
  func.func @_classifier_kernel(%arg0: i32, %arg1: memref<1x8x133xf32, #tpu.memory_space<vmem>>, %arg2: memref<6x8x8xf32, #tpu.memory_space<vmem>>, %arg3: memref<8x1xf32, #tpu.memory_space<vmem>>, %arg4: memref<1x8x128xf32, #tpu.memory_space<vmem>>) attributes {dimension_semantics = [#tpu.dimension_semantics<parallel>], iteration_bounds = array<i64: 4>, scalar_prefetch = 0 : i64, scratch_operands = 0 : i64, tpu.core_type = #tpu.core_type<tc>, window_params = [{transform_indices = @transform_0, window_bounds = array<i64: 1, 8, 133>}, {pipeline_mode = #tpu.pipeline_mode<synchronous>, transform_indices = @transform_1, window_bounds = array<i64: 6, 8, 8>}, {pipeline_mode = #tpu.pipeline_mode<synchronous>, transform_indices = @transform_2, window_bounds = array<i64: 8, 1>}, {transform_indices = @transform_3, window_bounds = array<i64: 1, 8, 128>}]} {
    %c0 = arith.constant 0 : index
    %c0_0 = arith.constant 0 : index
    %c0_1 = arith.constant 0 : index
    %0 = vector.load %arg1[%c0, %c0_0, %c0_1] : memref<1x8x133xf32, #tpu.memory_space<vmem>>, vector<1x8x133xf32>
    %1 = vector.shape_cast %0 : vector<1x8x133xf32> to vector<8x133xf32>
    %cst = arith.constant 0.000000e+00 : f32
    %2 = vector.broadcast %cst : f32 to vector<8x128xf32>
    %c0_2 = arith.constant 0 : index
    %c0_3 = arith.constant 0 : index
    %c0_4 = arith.constant 0 : index
    %3 = vector.load %arg2[%c0_2, %c0_3, %c0_4] : memref<6x8x8xf32, #tpu.memory_space<vmem>>, vector<1x8x8xf32>
    %4 = vector.shape_cast %3 : vector<1x8x8xf32> to vector<8x8xf32>
    %5 = vector.extract_strided_slice %1 {offsets = [0, 0], sizes = [8, 128], strides = [1, 1]} : vector<8x133xf32> to vector<8x128xf32>
    %cst_5 = arith.constant dense<0.000000e+00> : vector<8x128xf32>
    %6 = tpu.matmul %4, %5, %cst_5 {dimension_numbers = #tpu.dot_dimension_numbers<[1], [0], [0], [1], [0, 0, 1, 1], [], []>} : vector<8x8xf32>, vector<8x128xf32>, vector<8x128xf32> -> vector<8x128xf32>
    %7 = arith.addf %2, %6 : vector<8x128xf32>
    %c1 = arith.constant 1 : index
    %c0_6 = arith.constant 0 : index
    %c0_7 = arith.constant 0 : index
    %8 = vector.load %arg2[%c1, %c0_6, %c0_7] : memref<6x8x8xf32, #tpu.memory_space<vmem>>, vector<1x8x8xf32>
    %9 = vector.shape_cast %8 : vector<1x8x8xf32> to vector<8x8xf32>
    %10 = vector.extract_strided_slice %1 {offsets = [0, 1], sizes = [8, 128], strides = [1, 1]} : vector<8x133xf32> to vector<8x128xf32>
    %cst_8 = arith.constant dense<0.000000e+00> : vector<8x128xf32>
    %11 = tpu.matmul %9, %10, %cst_8 {dimension_numbers = #tpu.dot_dimension_numbers<[1], [0], [0], [1], [0, 0, 1, 1], [], []>} : vector<8x8xf32>, vector<8x128xf32>, vector<8x128xf32> -> vector<8x128xf32>
    %12 = arith.addf %7, %11 : vector<8x128xf32>
    %c2 = arith.constant 2 : index
    %c0_9 = arith.constant 0 : index
    %c0_10 = arith.constant 0 : index
    %13 = vector.load %arg2[%c2, %c0_9, %c0_10] : memref<6x8x8xf32, #tpu.memory_space<vmem>>, vector<1x8x8xf32>
    %14 = vector.shape_cast %13 : vector<1x8x8xf32> to vector<8x8xf32>
    %15 = vector.extract_strided_slice %1 {offsets = [0, 2], sizes = [8, 128], strides = [1, 1]} : vector<8x133xf32> to vector<8x128xf32>
    %cst_11 = arith.constant dense<0.000000e+00> : vector<8x128xf32>
    %16 = tpu.matmul %14, %15, %cst_11 {dimension_numbers = #tpu.dot_dimension_numbers<[1], [0], [0], [1], [0, 0, 1, 1], [], []>} : vector<8x8xf32>, vector<8x128xf32>, vector<8x128xf32> -> vector<8x128xf32>
    %17 = arith.addf %12, %16 : vector<8x128xf32>
    %c3 = arith.constant 3 : index
    %c0_12 = arith.constant 0 : index
    %c0_13 = arith.constant 0 : index
    %18 = vector.load %arg2[%c3, %c0_12, %c0_13] : memref<6x8x8xf32, #tpu.memory_space<vmem>>, vector<1x8x8xf32>
    %19 = vector.shape_cast %18 : vector<1x8x8xf32> to vector<8x8xf32>
    %20 = vector.extract_strided_slice %1 {offsets = [0, 3], sizes = [8, 128], strides = [1, 1]} : vector<8x133xf32> to vector<8x128xf32>
    %cst_14 = arith.constant dense<0.000000e+00> : vector<8x128xf32>
    %21 = tpu.matmul %19, %20, %cst_14 {dimension_numbers = #tpu.dot_dimension_numbers<[1], [0], [0], [1], [0, 0, 1, 1], [], []>} : vector<8x8xf32>, vector<8x128xf32>, vector<8x128xf32> -> vector<8x128xf32>
    %22 = arith.addf %17, %21 : vector<8x128xf32>
    %c4 = arith.constant 4 : index
    %c0_15 = arith.constant 0 : index
    %c0_16 = arith.constant 0 : index
    %23 = vector.load %arg2[%c4, %c0_15, %c0_16] : memref<6x8x8xf32, #tpu.memory_space<vmem>>, vector<1x8x8xf32>
    %24 = vector.shape_cast %23 : vector<1x8x8xf32> to vector<8x8xf32>
    %25 = vector.extract_strided_slice %1 {offsets = [0, 4], sizes = [8, 128], strides = [1, 1]} : vector<8x133xf32> to vector<8x128xf32>
    %cst_17 = arith.constant dense<0.000000e+00> : vector<8x128xf32>
    %26 = tpu.matmul %24, %25, %cst_17 {dimension_numbers = #tpu.dot_dimension_numbers<[1], [0], [0], [1], [0, 0, 1, 1], [], []>} : vector<8x8xf32>, vector<8x128xf32>, vector<8x128xf32> -> vector<8x128xf32>
    %27 = arith.addf %22, %26 : vector<8x128xf32>
    %c5 = arith.constant 5 : index
    %c0_18 = arith.constant 0 : index
    %c0_19 = arith.constant 0 : index
    %28 = vector.load %arg2[%c5, %c0_18, %c0_19] : memref<6x8x8xf32, #tpu.memory_space<vmem>>, vector<1x8x8xf32>
    %29 = vector.shape_cast %28 : vector<1x8x8xf32> to vector<8x8xf32>
    %30 = vector.extract_strided_slice %1 {offsets = [0, 5], sizes = [8, 128], strides = [1, 1]} : vector<8x133xf32> to vector<8x128xf32>
    %cst_20 = arith.constant dense<0.000000e+00> : vector<8x128xf32>
    %31 = tpu.matmul %29, %30, %cst_20 {dimension_numbers = #tpu.dot_dimension_numbers<[1], [0], [0], [1], [0, 0, 1, 1], [], []>} : vector<8x8xf32>, vector<8x128xf32>, vector<8x128xf32> -> vector<8x128xf32>
    %32 = arith.addf %27, %31 : vector<8x128xf32>
    %c0_21 = arith.constant 0 : index
    %c0_22 = arith.constant 0 : index
    %33 = vector.load %arg3[%c0_21, %c0_22] : memref<8x1xf32, #tpu.memory_space<vmem>>, vector<8x1xf32>
    %34 = vector.broadcast %33 : vector<8x1xf32> to vector<8x128xf32>
    %35 = arith.addf %32, %34 : vector<8x128xf32>
    %cst_23 = arith.constant dense<0xFF800000> : vector<128xf32>
    %36 = vector.multi_reduction <maximumf>, %35, %cst_23 [0] : vector<8x128xf32> to vector<128xf32>
    %37 = vector.shape_cast %36 : vector<128xf32> to vector<1x128xf32>
    %38 = vector.broadcast %37 : vector<1x128xf32> to vector<8x128xf32>
    %39 = arith.subf %35, %38 : vector<8x128xf32>
    %40 = math.exp %39 : vector<8x128xf32>
    %cst_24 = arith.constant dense<0.000000e+00> : vector<128xf32>
    %41 = vector.multi_reduction <add>, %40, %cst_24 [0] : vector<8x128xf32> to vector<128xf32>
    %42 = vector.shape_cast %41 : vector<128xf32> to vector<1x128xf32>
    %43 = math.log %42 : vector<1x128xf32>
    %44 = vector.broadcast %43 : vector<1x128xf32> to vector<8x128xf32>
    %45 = arith.subf %39, %44 : vector<8x128xf32>
    %c0_25 = arith.constant 0 : index
    %c0_26 = arith.constant 0 : index
    %c0_27 = arith.constant 0 : index
    %46 = vector.load %arg4[%c0_25, %c0_26, %c0_27] : memref<1x8x128xf32, #tpu.memory_space<vmem>>, vector<1x8x128xf32>
    %47 = vector.shape_cast %46 : vector<1x8x128xf32> to vector<8x128xf32>
    %48 = vector.shape_cast %45 : vector<8x128xf32> to vector<1x8x128xf32>
    tpu.vector_store %arg4[%c0_25, %c0_26, %c0_27], %48 {strides = array<i32>} : memref<1x8x128xf32, #tpu.memory_space<vmem>>, vector<1x8x128xf32>,
    return
  }
  func.func @transform_0(%arg0: i32) -> (i32, i32, i32) {
    %c0_i32 = arith.constant 0 : i32
    %c0_i32_0 = arith.constant 0 : i32
    %c0_i32_1 = arith.constant 0 : i32
    return %arg0, %c0_i32, %c0_i32_0 : i32, i32, i32
  }
  func.func @transform_1(%arg0: i32) -> (i32, i32, i32) {
    %c0_i32 = arith.constant 0 : i32
    %c0_i32_0 = arith.constant 0 : i32
    %c0_i32_1 = arith.constant 0 : i32
    %c0_i32_2 = arith.constant 0 : i32
    return %c0_i32, %c0_i32_0, %c0_i32_1 : i32, i32, i32
  }
  func.func @transform_2(%arg0: i32) -> (i32, i32) {
    %c0_i32 = arith.constant 0 : i32
    %c0_i32_0 = arith.constant 0 : i32
    %c0_i32_1 = arith.constant 0 : i32
    return %c0_i32, %c0_i32_0 : i32, i32
  }
  func.func @transform_3(%arg0: i32) -> (i32, i32, i32) {
    %c0_i32 = arith.constant 0 : i32
    %c0_i32_0 = arith.constant 0 : i32
    %c0_i32_1 = arith.constant 0 : i32
    return %arg0, %c0_i32, %c0_i32_0 : i32, i32, i32
  }
}

</mosaic_0001>

<bundles_post_ra>
// kernel: tpu_custom_call.1
= control target key start
LH: loop header
LB: loop body
LE: loop exit
PB: predicated region body
PF: predicated region fallthrough
CT: control target
= control target key end

     0   :  { %8 = vsyncpa [#allocation3], 0  ;;  %s1288_s0 = inlined_call_operand.hbm [shape: f32[4,8,133], index: 0, kind: input, shape index: {}]   ;;  %s1289_s1 = inlined_call_operand.hbm [shape: f32[6,8,8], index: 1, kind: input, shape index: {}]   ;;  %s1290_s2 = inlined_call_operand.vmem [shape: f32[8,1], index: 2, kind: input, shape index: {}]   ;;  %s1291_s3 = inlined_call_operand.hbm [shape: f32[4,8,128], index: 3, kind: output, shape index: {}]  }
   0x1   :  { %10 = vsyncpa [#allocation3 + $0x1], 0 }
   0x2   :  { %11 = vsyncpa [#allocation6], 0 }
   0x3   :  { %12 = vsyncpa [#allocation4], 0 }
   0x4   :  { %14 = vsyncpa [#allocation4 + $0x1], 0  ;;  %s1108_s12 = smov 0   ;;  %s1110_s13 = smov 0  }
   0x5   :  { %s1112_s14 = smov 0   ;;  %s1114_s15 = smov 0  }
   0x6 LB: > { %s1129_s16 = sadd.s32 4294967295, %s1073_s15   ;;  %s815_s17 = sadd.s32 4294967294, %s1073_s15   ;;  %s1073_s15 = sphi %s1114_s15, %s1312_s15   ;;  %s1069_s14 = sphi %s1112_s14, %s1311_s14   ;;  %s1065_s13 = sphi %s1110_s13, %s1310_s13   ;;  %s1061_s12 = sphi %s1108_s12, %s1309_s12  }
   0x7   : > { %p40_p0 = scmp.ne.s32.totalorder %s1065_s13, %s1061_s12  ;;  %p1292_p1 = scmp.eq.s32.totalorder %s1129_s16, 0 }
   0x8   : > { %p112_p3 = scmp.eq.s32.totalorder %s815_s17, 3  ;;  %p816_p5 = scmp.ge.s32.totalorder %s1073_s15, 1 }
   0x9   : > { %p1138_p4 = por %p1292_p1, %p40_p0  ;;  %p119_p7 = scmp.lt.s32.totalorder %s1073_s15, 5 }
   0xa   : > { %p1143_p6 = por %p112_p3, %p40_p0  ;;  %s1075_s21 = smov [#allocation5]  }
   0xb   : > { %s1296_s18 = scalar_select %p1138_p4, 1, 0 }
   0xc   : > { %s1297_s19 = scalar_select %p1143_p6, 1, 0 }
   0xd   : > { %p1148_p8 = pnand %p816_p5, %p119_p7  ;;  %s131_s22 = sshll.u32 %s1075_s21, 4  ;;  %s132_s22 = int_to_ptr.vmem [resolvable:$true] %s131_s22 }
   0xe   : > { %s1161_s24 = sadd.s32 1, %s1073_s15   ;;  %s27_s25 = sadd.s32 1, %s1069_s14 }
   0xf   : > { %s1298_s20 = scalar_select %p1148_p8, 1, 0 }
  0x10   : > { %p887_p9 = pneg %p1148_p8  ;;  %s24_s26 = ssub.s32 %s1073_s15, %s1161_s24 }
  0x11   : > { %s962_s27 = scalar_lea.vmem %s132_s22, 768  ;;  %p970_p3 = scmp.lt.s32.totalorder %s132_s22, %s132_s22 }
  0x12   : > { %p1156_p10 = pnand %p887_p9, %p1292_p1  ;;  %p963_p12 = scmp.ne.s32.totalorder %s132_s22, %s962_s27 }
  0x13   : > { %p971_p5 = scmp.lt.s32.totalorder %s962_s27, %s962_s27 }
  0x14   : > { %p953_p11 = pneg %p1156_p10 }
  0x15   : > { %p972_p7 = por %p971_p5, %p970_p3 }
  0x16   : > { %p965_p13 = pnand %p963_p12, %p953_p11 }
  0x18   : > { %p966_p0 = pneg %p965_p13 }
  0x1a   : > { %p973_p2 = pnand %p972_p7, %p966_p0 }
  0x1c   : > { %976 = shalt.err (!%p973_p2)
}
  0x1d   : > { %s1076_s28 = smov 128   ;;  %s1077_s29 = smov 8  }
  0x1e   : > { %890 = dma.hbm_to_vmem [thread:$0]  (!%p1156_p10), %s1289_s1, 768, %s132_s22, [#allocation6], %s1076_s28, %s1076_s28, %s1077_s29  }
  0x1f   : > { %p25_p9 = scmp.eq.s32.totalorder %s24_s26, 0  ;;  %p34_p11 = scmp.ne.s32.totalorder %s1069_s14, %s1065_s13 }
  0x20   : > { %p35_p12 = scmp.eq.s32.totalorder %s1073_s15, 0  ;;  %p900_p2 = scmp.lt.s32.totalorder %s1073_s15, 4 }
  0x21   : > { %s1178_s5 = scalar_select %p25_p9, %s1069_s14, %s27_s25  }
  0x22   : > { %p36_p13 = por %p35_p12, %p34_p11  ;;  %p1300_p0 = scmp.eq.s32.totalorder %s1129_s16, 3 }
  0x23   : > { %s148_s7 = sand.u32 1, %s1069_s14   ;;  %s836_s8 = sshll.u32 %s1073_s15, 8 }
  0x24   : > { %p1182_p3 = por %p1300_p0, %p34_p11  ;;  %s819_s9 = sshll.u32 %s148_s7, 4 }
  0x25   : > { %s1191_s17 = scalar_lea.hbm %s1288_s0, %s836_s8  ;;  %s152_s21 = scalar_lea.vmem [#allocation2], %s819_s9 }
  0x26   : > { %s1301_s6 = scalar_select %p1182_p3, 1, 0 }
  0x27   : > { %s160_s22 = sshll.u32 %s152_s21, 4  ;;  %p1193_p10 = pnand %p900_p2, %p36_p13  ;;  %s161_s22 = int_to_ptr.vmem [resolvable:$true] %s160_s22 }
  0x28   : > { %s149_s25 = scalar_lea.sflag [#allocation3], %s148_s7  ;;  %s977_s26 = scalar_lea.hbm %s1191_s17, 256 }
  0x29   : > { %p978_p5 = scmp.ne.s32.totalorder %s1191_s17, %s977_s26  ;;  %p979_p7 = pneg %p1193_p10 }
  0x2a   : > { %s982_s29 = scalar_lea.hbm %s1288_s0, 1024  ;;  %p983_p12 = scmp.lt.s32.totalorder %s1191_s17, %s1288_s0 }
  0x2b   : > { %p980_p9 = pnand %p979_p7, %p978_p5  ;;  %p984_p2 = scmp.lt.s32.totalorder %s982_s29, %s977_s26 }
  0x2d   : > { %p981_p11 = pneg %p980_p9  ;;  %p985_p13 = por %p984_p2, %p983_p12 }
  0x2f   : > { %p986_p0 = pnand %p985_p13, %p981_p11 }
  0x31   : > { %989 = shalt.err (!%p986_p0)
}
  0x32   : > { %s990_s8 = scalar_lea.vmem %s161_s22, 256  ;;  %s1078_s7 = smov [#allocation2]  }
  0x33   : > { %p991_p1 = scmp.ne.s32.totalorder %s161_s22, %s990_s8  ;;  %s995_s9 = sshll.u32 %s1078_s7, 4  ;;  %s996_s9 = int_to_ptr.vmem [resolvable:$false] %s995_s9 }
  0x34   : > { %s997_s10 = scalar_lea.vmem %s996_s9, 512  ;;  %p998_p5 = scmp.lt.s32.totalorder %s161_s22, %s996_s9 }
  0x35   : > { %p993_p6 = pnand %p991_p1, %p979_p7  ;;  %p999_p9 = scmp.lt.s32.totalorder %s997_s10, %s990_s8 }
  0x37   : > { %p994_p3 = pneg %p993_p6  ;;  %p1000_p4 = por %p999_p9, %p998_p5 }
  0x39   : > { %p1001_p8 = pnand %p1000_p4, %p994_p3 }
  0x3b   : > { %1004 = shalt.err (!%p1001_p8)
}
  0x3c   : > { %894 = dma.hbm_to_vmem [thread:$0]  (!%p1193_p10), %s1191_s17, 256, %s161_s22, %s149_s25  }
  0x3d   : > { %p1303_p11 = scmp.ne.s32.totalorder %s1298_s20, 0 }
  0x3e   : > { %s1214_s11 = sand.u32 (!%p1303_p11), 1, %s1065_s13   ;;  %p1304_p1 = scmp.ne.s32.totalorder (!%p1303_p11), %s1296_s18, 0 }
  0x3f   : > { %169 = sbr.rel (%p1303_p11) target bundleno = 478 (0x1de), region = 32  ;;  %s823_s21 = sshll.u32 (!%p1303_p11), %s1214_s11, 4 }
  0x40   : > { %s172_s26 = scalar_lea.sflag (!%p1303_p11), [#allocation3], %s1214_s11  ;;  %s175_s27 = scalar_lea.vmem (!%p1303_p11), [#allocation2], %s823_s21 }
  0x44   : > { %1048 = dma.done.wait (%p1304_p1), %s172_s26, 256  }
  0x45   : > { %1050 = vsyncadd (%p1304_p1), %s172_s26, 4294967040  ;;  %p1305_p4 = scmp.eq.s32.totalorder %s1129_s16, 0 }
  0x47   : > { %1052 = dma.done.wait (%p1305_p4), [#allocation6], 768   ;;  %p1306_p6 = pmov %p1305_p4 }
  0x48   : > { %v1079_v0 = vmov 0.0   ;;  %vm1080_vm0 = vmmov 0   ;;  %v202_v1 = vld [vmem:[%s175_s27] sm:$0xff]  ;;  %s1081_s18 = smov 126   ;;  %s1082_s20 = smov 127   ;;  %v203_v3 = vld [vmem:[%s175_s27 + $0x8] sm:$0xff] }
  0x49   : > { %1054 = vsyncadd (%p1306_p6), [#allocation6], 4294966528  ;;  %849 = vmatprep.subr.mxu0 %v1079_v0  ;;  %854 = vmatprep.subr.mxu1 %v1079_v0  ;;  %v204_v2 = vld [vmem:[#allocation5] sm:$0xff]  ;;  %vm216_vm1 = vcmask 64512   ;;  %v1083_v4 = vmov 0   ;;  %s1084_s17 = smov 125  }
  0x4a   : > { %851 = vmatprep.mubr.msk.f32.mxu0 %vm1080_vm0, %v1079_v0  ;;  %856 = vmatprep.mubr.msk.f32.mxu1 %vm1080_vm0, %v1079_v0  ;;  %s1085_s22 = smov 124   ;;  %s1086_s23 = smov 123   ;;  %v695_v5 = vld [vmem:[%s1290_s2] sm:$0xff]  ;;  %vm213_vm2 = vcmask 1039360   ;;  %vm369_vm3 = vcmask 1031168   ;;  %v206_v10 = vld [vmem:[#allocation5 + $0x8] sm:$0xff] }
  0x4b   : > { %365 = vrot.lane.b32.xlu1 %v202_v1, %s1081_s18  ;;  %209 = vrot.lane.b32.xlu0 %v202_v1, %s1082_s20  ;;  %vm452_vm4 = vcmask 1022976   ;;  %v364_v15 = vld [vmem:[#allocation5 + $0x10] sm:$0xff]  ;;  %v447_v16 = vld [vmem:[#allocation5 + $0x18] sm:$0xff]  ;;  %vm535_vm5 = vcmask 1014784   ;;  %v530_v20 = vld [vmem:[#allocation5 + $0x20] sm:$0xff]  ;;  %vm618_vm6 = vcmask 1006592  }
  0x4c   : > { %855 = vmatpush3.msra.mxu1 %v202_v1  ;;  %946 = vset.pattern.permute.xlu0 %v1083_v4  ;;  %v613_v24 = vld [vmem:[#allocation5 + $0x28] sm:$0xff]  ;;  %s825_s29 = sshll.u32 %s1214_s11, 3  ;;  %s833_s30 = sshll.u32 %s1129_s16, 7 }
  0x4d   : > { %864 = vmatprep.subr.mxu1 %v1079_v0  ;;  %857 = vmatmul.mubr.msk.f32.vlgmr.msra.gmra.mxu1 %vm216_vm1, %v204_v2  ;;  %s201_s4 = scalar_lea.vmem [#allocation7], %s825_s29  ;;  %s733_s10 = scalar_lea.hbm %s1291_s3, %s833_s30 }
  0x4e   : > { %866 = vmatprep.mubr.msk.f32.mxu1 %vm1080_vm0, %v1079_v0  ;;  %s735_s8 = sshll.u32 %s201_s4, 4  ;;  %s722_s21 = scalar_lea.sflag [#allocation4], %s1214_s11  ;;  %s736_s8 = int_to_ptr.vmem [resolvable:$true] %s735_s8 }
  0x4f   : > { %367 = vrot.lane.b32.xlu1 %v203_v3, %s1081_s18  ;;  %211 = vrot.lane.b32.xlu0 %v203_v3, %s1082_s20  ;;  %s1005_s26 = scalar_lea.vmem %s736_s8, 128  ;;  %p1307_p3 = scmp.ne.s32.totalorder %s1301_s6, 0 }
  0x50   : > { %p1006_p8 = scmp.ne.s32.totalorder %s736_s8, %s1005_s26  ;;  %s1087_s27 = smov [#allocation7]  }
  0x51   : > { %s1009_s18 = sshll.u32 %s1087_s27, 4  ;;  %s1010_s18 = int_to_ptr.vmem [resolvable:$false] %s1009_s18 }
  0x52   : > { %p1007_p10 = pnand %p1006_p8, %p1307_p3  ;;  %s1011_s16 = scalar_lea.vmem %s1010_s18, 256 }
  0x53   : > { %450 = vrot.lane.b32.xlu1 %v203_v3, %s1084_s17  ;;  %448 = vrot.lane.b32.xlu0 %v202_v1, %s1084_s17  ;;  %p1012_p12 = scmp.lt.s32.totalorder %s736_s8, %s1010_s18  ;;  %p1013_p2 = scmp.lt.s32.totalorder %s1011_s16, %s1005_s26 }
  0x54   : > { %p1008_p7 = pneg %p1007_p10 }
  0x55   : > { %p1014_p13 = por %p1013_p2, %p1012_p12 }
  0x57   : > { %533 = vrot.lane.b32.xlu1 %v203_v3, %s1085_s22  ;;  %531 = vrot.lane.b32.xlu0 %v202_v1, %s1085_s22  ;;  %p1015_p0 = pnand %p1014_p13, %p1008_p7 }
  0x5b   : > { %616 = vrot.lane.b32.xlu1 %v203_v3, %s1086_s23  ;;  %614 = vrot.lane.b32.xlu0 %v202_v1, %s1086_s23 }
  0x5f   : > { %698 = vperm.xlu0 %946, %v695_v5  }
  0xbd   : > { %v366_v6 = vpop.permute.xlu1 %365  ;;  %v210_v7 = vpop.permute.xlu0 %209 }
  0xc1   : > { %v368_v8 = vpop.permute.xlu1 %367  ;;  %v212_v9 = vpop.permute.xlu0 %211 }
  0xc2   : > { %v214_v11 = vsel %vm213_vm2, %v210_v7, %v212_v9  ;;  %v370_v12 = vsel %vm369_vm3, %v366_v6, %v368_v8 }
  0xc3   : > { %850 = vmatpush3.msra.mxu0 %v214_v11 }
  0xc4   : > { %859 = vmatprep.subr.mxu0 %v1079_v0  ;;  %852 = vmatmul.mubr.msk.f32.vlgmr.msra.gmra.mxu0 %vm216_vm1, %v206_v10 }
  0xc5   : > { %v451_v13 = vpop.permute.xlu1 %450  ;;  %860 = vmatpush3.msra.mxu0 %v370_v12  ;;  %v449_v14 = vpop.permute.xlu0 %448  ;;  %861 = vmatprep.mubr.msk.f32.mxu0 %vm1080_vm0, %v1079_v0 }
  0xc6   : > { %v453_v17 = vsel %vm452_vm4, %v449_v14, %v451_v13  ;;  %869 = vmatprep.subr.mxu0 %v1079_v0 }
  0xc7   : > { %865 = vmatpush3.msra.mxu1 %v453_v17 }
  0xc8   : > { %862 = vmatmul.mubr.msk.f32.vlgmr.msra.gmra.mxu0 %vm216_vm1, %v364_v15  ;;  %867 = vmatmul.mubr.msk.f32.vlgmr.msra.gmra.mxu1 %vm216_vm1, %v447_v16 }
  0xc9   : > { %v534_v18 = vpop.permute.xlu1 %533  ;;  %v532_v19 = vpop.permute.xlu0 %531  ;;  %871 = vmatprep.mubr.msk.f32.mxu0 %vm1080_vm0, %v1079_v0  ;;  %874 = vmatprep.subr.mxu1 %v1079_v0 }
  0xca   : > { %v536_v21 = vsel %vm535_vm5, %v532_v19, %v534_v18  ;;  %876 = vmatprep.mubr.msk.f32.mxu1 %vm1080_vm0, %v1079_v0 }
  0xcb   : > { %870 = vmatpush3.msra.mxu0 %v536_v21 }
  0xcc   : > { %872 = vmatmul.mubr.msk.f32.vlgmr.msra.gmra.mxu0 %vm216_vm1, %v530_v20 }
  0xcd   : > { %v617_v22 = vpop.permute.xlu1 %616  ;;  %v615_v23 = vpop.permute.xlu0 %614 }
  0xce   : > { %v619_v25 = vsel %vm618_vm6, %v615_v23, %v617_v22 }
  0xcf   : > { %875 = vmatpush3.msra.mxu1 %v619_v25 }
  0xd0   : > { %877 = vmatmul.mubr.msk.f32.vlgmr.msra.gmra.mxu1 %vm216_vm1, %v613_v24 }
  0xda   : > { %v699_v41 = vpop.permute.xlu0 %698 }
 0x10d   : > { %v359_v26 = vpop.f32.mrf.mxu1 }
 0x10f   : > { %v858_v27 = vpop.f32.mrf.mxu1 }
 0x184   : > { %v286_v28 = vpop.f32.mrf.mxu0 }
 0x185   : > { %v360_v29 = vadd.f32 %v359_v26, %v286_v28 }
 0x186   : > { %v853_v30 = vpop.f32.mrf.mxu0 }
 0x188   : > { %v441_v31 = vpop.f32.mrf.mxu0  ;;  %v524_v32 = vpop.f32.mrf.mxu1 }
 0x189   : > { %v445_v33 = vadd.f32 %v441_v31, %v360_v29 }
 0x18a   : > { %v863_v34 = vpop.f32.mrf.mxu0  ;;  %v868_v35 = vpop.f32.mrf.mxu1 }
 0x18b   : > { %v528_v36 = vadd.f32 %v524_v32, %v445_v33 }
 0x18c   : > { %v607_v37 = vpop.f32.mrf.mxu0 }
 0x18d   : > { %v611_v39 = vadd.f32 %v607_v37, %v528_v36 }
 0x18e   : > { %v873_v38 = vpop.f32.mrf.mxu0 }
 0x190   : > { %v690_v40 = vpop.f32.mrf.mxu1 }
 0x191   : > { %v694_v42 = vadd.f32 %v690_v40, %v611_v39 }
 0x192   : > { %v878_v43 = vpop.f32.mrf.mxu1 }
 0x193   : > { %v701_v44 = vadd.f32 %v699_v41, %v694_v42 }
 0x195   : > { %v702_v45 = vrot.slane %v701_v44, 4 }
 0x197   : > { %v703_v46 = vmax.f32 %v701_v44, %v702_v45 }
 0x199   : > { %v704_v47 = vrot.slane %v703_v46, 2 }
 0x19b   : > { %v705_v48 = vmax.f32 %v703_v46, %v704_v47 }
 0x19d   : > { %v706_v49 = vrot.slane %v705_v48, 1 }
 0x19f   : > { %v707_v50 = vmax.f32 %v705_v48, %v706_v49 }
 0x1a1   : > { %v708_v51 = vsub.f32 %v701_v44, %v707_v50 }
 0x1a3   : > { %v709_v52 = vmul.f32 1.442695, %v708_v51 }
 0x1a5   : > { %947 = vpow2.f32 %v709_v52 }
 0x1b2   : > { %v948_v53 = vpop.eup %947 }
 0x1b3   : > { %v711_v54 = vrot.slane %v948_v53, 4 }
 0x1b5   : > { %v712_v55 = vadd.f32 %v948_v53, %v711_v54 }
 0x1b7   : > { %v713_v56 = vrot.slane %v712_v55, 2 }
 0x1b9   : > { %v714_v57 = vadd.f32 %v713_v56, %v712_v55 }
 0x1bb   : > { %v715_v58 = vrot.slane %v714_v57, 1 }
 0x1bd   : > { %v716_v59 = vadd.f32 %v715_v58, %v714_v57 }
 0x1bf   : > { %949 = vlog2.f32 %v716_v59 }
 0x1cc   : > { %v950_v60 = vpop.eup %949 }
 0x1cd   : > { %v718_v61 = vmul.f32 0.6931472, %v950_v60 }
 0x1cf   : > { %v719_v62 = vsub.f32 %v708_v51, %v718_v61 }
 0x1d1   : > { %720 = vst [vmem:[%s201_s4] sm:$0xff] %v719_v62 }
 0x1d2   : > { %1018 = shalt.err (!%p1015_p0)
}
 0x1d3   : > { %s1019_s20 = scalar_lea.hbm %s733_s10, 128  ;;  %s1023_s22 = scalar_lea.hbm %s1291_s3, 512 }
 0x1d4   : > { %p1020_p5 = scmp.ne.s32.totalorder %s733_s10, %s1019_s20  ;;  %p1024_p1 = scmp.lt.s32.totalorder %s733_s10, %s1291_s3 }
 0x1d5   : > { %p1025_p4 = scmp.lt.s32.totalorder %s1023_s22, %s1019_s20 }
 0x1d6   : > { %p1021_p9 = pnand %p1020_p5, %p1307_p3 }
 0x1d7   : > { %p1026_p6 = por %p1025_p4, %p1024_p1 }
 0x1d8   : > { %p1022_p11 = pneg %p1021_p9 }
 0x1da   : > { %p1027_p8 = pnand %p1026_p6, %p1022_p11 }
 0x1dc   : > { %1030 = shalt.err (!%p1027_p8)
}
 0x1dd   : > { %885 = dma.vmem_to_hbm [thread:$0]  (%p1307_p3), %s736_s8, 128, %s733_s10, %s722_s21  }
 0x1de PF: > { %p902_p10 = scmp.ge.s32.totalorder %s1073_s15, 2  ;;  %s747_s28 = sand.u32 1, %s1061_s12  }
 0x1df   : > { %p1308_p7 = scmp.ne.s32.totalorder %s1297_s19, 0  ;;  %s748_s29 = scalar_lea.sflag [#allocation4], %s747_s28 }
 0x1e1   : > { %p896_p12 = pnand %p902_p10, %p1308_p7 }
 0x1e3   : > { %p897_p2 = pneg %p896_p12 }
 0x1e5   : > { %1056 = dma.done.wait (%p897_p2), %s748_s29, 128  }
 0x1e6   : > { %1058 = vsyncadd (%p897_p2), %s748_s29, 4294967168  ;;  %p17_p13 = scmp.ge.s32.totalorder %s1161_s24, 6   ;;  %s1309_s12 = smov %s1065_s13 }
 0x1e7   : > { %s1310_s13 = smov %s1069_s14  ;;  %s1311_s14 = smov %s1178_s5 }
 0x1e8   : > { %s1312_s15 = smov %s1161_s24  ;;  %19 = sbr.rel (!%p17_p13) target bundleno = 6 (0x6), region = 86 }
 0x1ed   :  { %753 = vsyncpa [#allocation3], 1 }
 0x1ee   :  { %755 = vsyncpa [#allocation3 + $0x1], 1 }
 0x1ef   :  { %756 = vsyncpa [#allocation6], 1 }
 0x1f0   :  { %757 = vsyncpa [#allocation4], 1 }
 0x1f1   :  { %759 = vsyncpa [#allocation4 + $0x1], 1 }

</bundles_post_ra>
